<compile_context>
chip_gen: v7x
topology: tpu7x:2x2x1
jax: 0.10.0
libtpu: 0.0.40
codegen_flags: <defaults>
</compile_context>

<pallas_src>
import functools

import jax
import jax.numpy as jnp
from jax import lax
from jax.experimental import pallas as pl
from jax.experimental.pallas import tpu as pltpu


def _tpu_mem_params():
    """(pred-block byte budget, vmem_limit_bytes), TPU-generation aware."""
    vmem = None
    try:
        vmem = getattr(pltpu.get_tpu_info(), "vmem_capacity_bytes", None)
    except Exception:
        vmem = None
    if vmem is None:
        return 4 * 1024 * 1024, 32 * 1024 * 1024      # conservative default
    if vmem >= 96 * 1024 * 1024:                      # v5e / v6e: 128 MiB VMEM
        return 8 * 1024 * 1024, 64 * 1024 * 1024
    return 6 * 1024 * 1024, 32 * 1024 * 1024          # v7x: 64 MiB physical


def _tile_rows(r, c, itemsize, budget_bytes):
    """Pick (rows_per_slab, rows_per_block, padded_rows) along the HW//128 axis.

    rows_per_block sizes the DMA block (pred block ~<= budget_bytes);
    rows_per_slab sizes the in-kernel compute slab so the f32 intermediates of
    the softmax / one-hot chain stay small; padded_rows makes the block tiling
    exact (the padded tail is masked inside the kernel).  Slab size is a
    multiple of 32 rows so dynamic sublane slices stay tile-aligned for
    f32 / bf16 pred and int8 labels.
    """
    sub = max(32, min(128, ((256 * 1024) // (c * 128 * 4)) // 32 * 32))
    if r <= sub:
        return r, r, r                     # one slab == one block == whole row
    # avoid over-padding small row counts
    while sub > 32 and (pl.cdiv(r, sub) * sub - r) > max(32, r // 16):
        sub -= 32
    budget_rows = max(sub, budget_bytes // (c * 128 * itemsize))
    if budget_rows >= r:                   # whole (padded) row fits one block
        blk = pl.cdiv(r, sub) * sub
        return sub, blk, blk
    blk = max(sub, (budget_rows // sub) * sub)
    return sub, blk, pl.cdiv(r, blk) * blk


def _slab_update(x_raw, t_raw, inter_ref, sums_ref, row0, *, multiclass, hw,
                 needs_mask):
    """Accumulate one (C, SUB, 128) slab into the resident (1, C) outputs."""
    x = x_raw.astype(jnp.float32)                      # cast in-kernel
    c, sub, lanes = x.shape

    valid = None
    if needs_mask:
        s_iota = lax.broadcasted_iota(jnp.int32, (1, sub, lanes), 1)
        l_iota = lax.broadcasted_iota(jnp.int32, (1, sub, lanes), 2)
        valid = (row0 + s_iota) * 128 + l_iota < hw    # (1, SUB, 128)

    if multiclass:
        # Channel softmax: exp on the EUP, one (1, SUB, 128) reciprocal row,
        # broadcast multiply (C x fewer divides).  The float one-hot is never
        # materialized from HBM - it's an iota == label compare.
        m = jnp.max(x, axis=0, keepdims=True)
        e = jnp.exp(x - m)
        p = e * (1.0 / jnp.sum(e, axis=0, keepdims=True))
        t = t_raw.astype(jnp.int32)                    # (1, SUB, 128)
        onehot = lax.broadcasted_iota(jnp.int32, x.shape, 0) == t
        if needs_mask:
            p = jnp.where(valid, p, 0.0)
            onehot = jnp.logical_and(onehot, valid)
        i_term = jnp.where(onehot, p, 0.0)
        s_m = onehot.astype(jnp.float32)
    else:
        # num_classes == 1: sigmoid path (padded labels are already zero).
        p = jax.nn.sigmoid(x)
        t = t_raw.astype(jnp.float32)
        if needs_mask:
            p = jnp.where(valid, p, 0.0)
        i_term = p * t
        s_m = t

    inter = i_term.sum(axis=2).sum(axis=1)             # (C,)
    sums = p.sum(axis=2).sum(axis=1) + s_m.sum(axis=2).sum(axis=1)
    inter_ref[...] += inter[None, :]
    sums_ref[...] += sums[None, :]


def _dice_kernel(pred_ref, tgt_ref, inter_ref, sums_ref, *, multiclass, hw,
                 rows_per_block, rows_per_slab, needs_mask):
    """pred_ref: (C, BLK, 128) logits; tgt_ref: (1, BLK, 128) labels.
    inter_ref / sums_ref: (1, C) f32 blocks, resident across the HW grid axis."""
    hw_id = pl.program_id(1)

    @pl.when(hw_id == 0)
    def _():
        inter_ref[...] = jnp.zeros_like(inter_ref)
        sums_ref[...] = jnp.zeros_like(sums_ref)

    num_slabs = rows_per_block // rows_per_slab        # static
    if num_slabs == 1:
        _slab_update(pred_ref[...], tgt_ref[...], inter_ref, sums_ref,
                     hw_id * rows_per_block, multiclass=multiclass, hw=hw,
                     needs_mask=needs_mask)
    else:
        # Rolled in-kernel loop over aligned compute slabs: large DMA block,
        # small live compute working set (replaces the old static lane-fold).
        @pl.loop(0, num_slabs)
        def _(k):
            start = pl.multiple_of(k * rows_per_slab, rows_per_slab)
            _slab_update(pred_ref[:, pl.ds(start, rows_per_slab), :],
                         tgt_ref[:, pl.ds(start, rows_per_slab), :],
                         inter_ref, sums_ref,
                         hw_id * rows_per_block + start,
                         multiclass=multiclass, hw=hw, needs_mask=needs_mask)


def _dice_sums(pred_nchw, target_nhw, num_classes):
    """Returns (inter, sums), each (N, C) f32, computed by the Pallas kernel."""
    N, C, H, W = pred_nchw.shape
    HW = H * W
    budget_bytes, vmem_limit = _tpu_mem_params()
    itemsize = jnp.dtype(pred_nchw.dtype).itemsize
    r = pl.cdiv(HW, 128)
    sub, blk, r_pad = _tile_rows(r, C, itemsize, budget_bytes)
    hw_pad = r_pad * 128
    needs_mask = hw_pad != HW

    pred3 = pred_nchw.reshape(N, C, HW)                # native dtype, no upcast
    tgt2 = target_nhw.reshape(N, HW)

    multiclass = num_classes != 1
    if multiclass:
        # HBM-bound kernel: int8 labels cut target traffic 4x vs int32.
        tgt2 = tgt2.astype(jnp.int8 if num_classes <= 127 else jnp.int32)
    elif jnp.issubdtype(tgt2.dtype, jnp.floating):
        tgt2 = tgt2.astype(jnp.float32)
    else:
        tgt2 = tgt2.astype(jnp.int8)

    if needs_mask:
        # Only hit when H*W is not already a multiple of 128 / the block size;
        # padded tail is masked out inside the kernel.
        pred3 = jnp.pad(pred3, ((0, 0), (0, 0), (0, hw_pad - HW)))
        tgt2 = jnp.pad(tgt2, ((0, 0), (0, hw_pad - HW)))

    pred4 = pred3.reshape(N, C, r_pad, 128)            # lanes = spatial
    tgt4 = tgt2.reshape(N, 1, r_pad, 128)

    kernel = functools.partial(
        _dice_kernel, multiclass=multiclass, hw=HW, rows_per_block=blk,
        rows_per_slab=sub, needs_mask=needs_mask)

    # TODO(synk): on v7x with N == 1 only one TensorCore is used; an extra
    # "parallel" grid axis splitting the HW range (partial (N, 2, C) outputs
    # summed in the JAX tail) would recover the idle core.
    inter3, sums3 = pl.pallas_call(
        kernel,
        grid=(N, r_pad // blk),                        # reduction (HW) axis last
        in_specs=[
            pl.BlockSpec((None, C, blk, 128), lambda b, h: (b, 0, h, 0)),
            pl.BlockSpec((None, 1, blk, 128), lambda b, h: (b, 0, h, 0)),
        ],
        out_specs=[
            # per-batch-row (1, C) output block, resident across the HW axis,
            # accumulated in VMEM and written back once per batch row.
            pl.BlockSpec((None, 1, C), lambda b, h: (b, 0, 0)),
            pl.BlockSpec((None, 1, C), lambda b, h: (b, 0, 0)),
        ],
        out_shape=[
            jax.ShapeDtypeStruct((N, 1, C), jnp.float32),
            jax.ShapeDtypeStruct((N, 1, C), jnp.float32),
        ],
        compiler_params=pltpu.CompilerParams(
            dimension_semantics=("parallel", "arbitrary"),
            vmem_limit_bytes=vmem_limit,
        ),
    )(pred4, tgt4)
    return inter3[:, 0, :], sums3[:, 0, :]


def dice_loss(pred, target, num_classes, weights=None, ignore_index=None):
    # TODO(synk): ignore_index is accepted but unused, matching the reference
    # PyTorch forward which also ignores it.
    inter, sums = _dice_sums(pred, target, num_classes)
    dice = jnp.mean(2.0 * inter / (sums + 1e-6), axis=0)   # (C,)
    if weights is not None:
        w = jnp.asarray(weights, dtype=jnp.float32)
        return jnp.mean((1.0 - dice) * w)
    return 1.0 - jnp.mean(dice)


class DiceLoss:
    def __init__(self, num_classes, weights=None, ignore_index=None):
        self.num_classes = num_classes
        self.weights = weights
        self.ignore_index = ignore_index

    def __call__(self, pred, target):
        return dice_loss(pred, target, self.num_classes,
                         weights=self.weights, ignore_index=self.ignore_index)


def _reference_dice_loss(pred, target, num_classes, weights=None):
    """Pure-JAX reference mirroring the PyTorch semantics."""
    pred = pred.astype(jnp.float32)
    if num_classes == 1:
        t = target.astype(jnp.float32)[:, None, :, :]
        p = jax.nn.sigmoid(pred)
    else:
        t = jax.nn.one_hot(target.astype(jnp.int32), num_classes,
                           dtype=jnp.float32)          # (N, H, W, C)
        t = jnp.transpose(t, (0, 3, 1, 2))             # (N, C, H, W)
        p = jax.nn.softmax(pred, axis=1)
    inter = jnp.sum(p * t, axis=(2, 3))
    sums = jnp.sum(p + t, axis=(2, 3))
    dice = jnp.mean(2.0 * inter / (sums + 1e-6), axis=0)
    if weights is not None:
        return jnp.mean((1.0 - dice) * jnp.asarray(weights, jnp.float32))
    return 1.0 - jnp.mean(dice)


if __name__ == "__main__":
    key = jax.random.PRNGKey(0)
    k1, k2, k3, k4, k5, k6 = jax.random.split(key, 6)

    # multi-class path
    N, C, H, W = 2, 4, 16, 16
    pred = jax.random.normal(k1, (N, C, H, W), dtype=jnp.float32)
    target = jax.random.randint(k2, (N, H, W), 0, C, dtype=jnp.int32)

    loss = jax.block_until_ready(DiceLoss(num_classes=C)(pred, target))
    ref = _reference_dice_loss(pred, target, C)
    assert jnp.allclose(loss, ref, atol=1e-5, rtol=1e-5), (loss, ref)

    # weighted multi-class path
    w = (0.5, 1.0, 1.5, 2.0)
    loss_w = jax.block_until_ready(DiceLoss(C, weights=w)(pred, target))
    ref_w = _reference_dice_loss(pred, target, C, weights=w)
    assert jnp.allclose(loss_w, ref_w, atol=1e-5, rtol=1e-5), (loss_w, ref_w)

    # binary (num_classes == 1) path
    pred_b = jax.random.normal(k3, (N, 1, H, W), dtype=jnp.float32)
    target_b = jax.random.randint(k4, (N, H, W), 0, 2, dtype=jnp.int32)
    loss_b = jax.block_until_ready(DiceLoss(num_classes=1)(pred_b, target_b))
    ref_b = _reference_dice_loss(pred_b, target_b, 1)
    assert jnp.allclose(loss_b, ref_b, atol=1e-5, rtol=1e-5), (loss_b, ref_b)

    # H*W not a multiple of 128 -> exercises the pad + in-kernel mask path
    Cp, Hp, Wp = 3, 10, 10
    pred_p = jax.random.normal(k5, (N, Cp, Hp, Wp), dtype=jnp.float32)
    target_p = jax.random.randint(k6, (N, Hp, Wp), 0, Cp, dtype=jnp.int32)
    loss_p = jax.block_until_ready(DiceLoss(num_classes=Cp)(pred_p, target_p))
    ref_p = _reference_dice_loss(pred_p, target_p, Cp)
    assert jnp.allclose(loss_p, ref_p, atol=1e-5, rtol=1e-5), (loss_p, ref_p)

    print("KERNEL_OK")
</pallas_src>

<mosaic_0001>
module attributes {stable_mosaic.version = 11 : i64} {
  func.func @_dice_kernel(%arg0: i32, %arg1: i32, %arg2: memref<1x4x2x128xf32, #tpu.memory_space<vmem>>, %arg3: memref<1x1x2x128xi8, #tpu.memory_space<vmem>>, %arg4: memref<1x1x4xf32, #tpu.memory_space<vmem>>, %arg5: memref<1x1x4xf32, #tpu.memory_space<vmem>>) attributes {dimension_semantics = [#tpu.dimension_semantics<parallel>, #tpu.dimension_semantics<arbitrary>], iteration_bounds = array<i64: 2, 1>, scalar_prefetch = 0 : i64, scratch_operands = 0 : i64, tpu.core_type = #tpu.core_type<tc>, window_params = [{transform_indices = @transform_0, window_bounds = array<i64: 1, 4, 2, 128>}, {transform_indices = @transform_1, window_bounds = array<i64: 1, 1, 2, 128>}, {transform_indices = @transform_2, window_bounds = array<i64: 1, 1, 4>}, {transform_indices = @transform_3, window_bounds = array<i64: 1, 1, 4>}]} {
    %c0_i32 = arith.constant 0 : i32
    %0 = arith.cmpi eq, %arg1, %c0_i32 : i32
    %1 = arith.extui %0 : i1 to i32
    %c0_i32_0 = arith.constant 0 : i32
    %2 = arith.cmpi ne, %1, %c0_i32_0 : i32
    scf.if %2 {
      %cst_29 = arith.constant 0.000000e+00 : f32
      %47 = vector.broadcast %cst_29 : f32 to vector<1x4xf32>
      %c0_30 = arith.constant 0 : index
      %c0_31 = arith.constant 0 : index
      %c0_32 = arith.constant 0 : index
      %48 = vector.load %arg4[%c0_30, %c0_31, %c0_32] : memref<1x1x4xf32, #tpu.memory_space<vmem>>, vector<1x1x4xf32>
      %49 = vector.shape_cast %48 : vector<1x1x4xf32> to vector<1x4xf32>
      %50 = vector.shape_cast %47 : vector<1x4xf32> to vector<1x1x4xf32>
      tpu.vector_store %arg4[%c0_30, %c0_31, %c0_32], %50 {strides = array<i32>} : memref<1x1x4xf32, #tpu.memory_space<vmem>>, vector<1x1x4xf32>,
      %cst_33 = arith.constant 0.000000e+00 : f32
      %51 = vector.broadcast %cst_33 : f32 to vector<1x4xf32>
      %c0_34 = arith.constant 0 : index
      %c0_35 = arith.constant 0 : index
      %c0_36 = arith.constant 0 : index
      %52 = vector.load %arg5[%c0_34, %c0_35, %c0_36] : memref<1x1x4xf32, #tpu.memory_space<vmem>>, vector<1x1x4xf32>
      %53 = vector.shape_cast %52 : vector<1x1x4xf32> to vector<1x4xf32>
      %54 = vector.shape_cast %51 : vector<1x4xf32> to vector<1x1x4xf32>
      tpu.vector_store %arg5[%c0_34, %c0_35, %c0_36], %54 {strides = array<i32>} : memref<1x1x4xf32, #tpu.memory_space<vmem>>, vector<1x1x4xf32>,
    } else {
    }
    %c0 = arith.constant 0 : index
    %c0_1 = arith.constant 0 : index
    %c0_2 = arith.constant 0 : index
    %c0_3 = arith.constant 0 : index
    %3 = vector.load %arg2[%c0, %c0_1, %c0_2, %c0_3] : memref<1x4x2x128xf32, #tpu.memory_space<vmem>>, vector<1x4x2x128xf32>
    %4 = vector.shape_cast %3 : vector<1x4x2x128xf32> to vector<4x2x128xf32>
    %c0_4 = arith.constant 0 : index
    %c0_5 = arith.constant 0 : index
    %c0_6 = arith.constant 0 : index
    %c0_7 = arith.constant 0 : index
    %5 = vector.load %arg3[%c0_4, %c0_5, %c0_6, %c0_7] : memref<1x1x2x128xi8, #tpu.memory_space<vmem>>, vector<1x1x2x128xi8>
    %6 = vector.shape_cast %5 : vector<1x1x2x128xi8> to vector<1x2x128xi8>
    %cst = arith.constant dense<0xFF800000> : vector<2x128xf32>
    %7 = vector.multi_reduction <maximumf>, %4, %cst [0] : vector<4x2x128xf32> to vector<2x128xf32>
    %8 = vector.shape_cast %7 : vector<2x128xf32> to vector<1x2x128xf32>
    %9 = vector.broadcast %8 : vector<1x2x128xf32> to vector<4x2x128xf32>
    %10 = arith.subf %4, %9 : vector<4x2x128xf32>
    %11 = math.exp %10 : vector<4x2x128xf32>
    %cst_8 = arith.constant dense<0.000000e+00> : vector<2x128xf32>
    %12 = vector.multi_reduction <add>, %11, %cst_8 [0] : vector<4x2x128xf32> to vector<2x128xf32>
    %13 = vector.shape_cast %12 : vector<2x128xf32> to vector<1x2x128xf32>
    %cst_9 = arith.constant 1.000000e+00 : f32
    %14 = vector.broadcast %cst_9 : f32 to vector<1x2x128xf32>
    %15 = arith.divf %14, %13 : vector<1x2x128xf32>
    %16 = vector.broadcast %15 : vector<1x2x128xf32> to vector<4x2x128xf32>
    %17 = arith.mulf %11, %16 : vector<4x2x128xf32>
    %18 = arith.extsi %6 : vector<1x2x128xi8> to vector<1x2x128xi32>
    %19 = tpu.iota {dimensions = array<i32: 0>} : vector<4x2x128xi32>
    %20 = vector.broadcast %18 : vector<1x2x128xi32> to vector<4x2x128xi32>
    %21 = arith.cmpi eq, %19, %20 : vector<4x2x128xi32>
    %cst_10 = arith.constant 0.000000e+00 : f32
    %22 = vector.broadcast %cst_10 : f32 to vector<4x2x128xf32>
    %23 = arith.select %21, %17, %22 : vector<4x2x128xi1>, vector<4x2x128xf32>
    %24 = arith.extui %21 : vector<4x2x128xi1> to vector<4x2x128xi32>
    %25 = arith.sitofp %24 : vector<4x2x128xi32> to vector<4x2x128xf32>
    %cst_11 = arith.constant dense<0.000000e+00> : vector<4x2xf32>
    %26 = vector.multi_reduction <add>, %23, %cst_11 [2] : vector<4x2x128xf32> to vector<4x2xf32>
    %cst_12 = arith.constant dense<0.000000e+00> : vector<4xf32>
    %27 = vector.multi_reduction <add>, %26, %cst_12 [1] : vector<4x2xf32> to vector<4xf32>
    %cst_13 = arith.constant dense<0.000000e+00> : vector<4x2xf32>
    %28 = vector.multi_reduction <add>, %17, %cst_13 [2] : vector<4x2x128xf32> to vector<4x2xf32>
    %cst_14 = arith.constant dense<0.000000e+00> : vector<4xf32>
    %29 = vector.multi_reduction <add>, %28, %cst_14 [1] : vector<4x2xf32> to vector<4xf32>
    %cst_15 = arith.constant dense<0.000000e+00> : vector<4x2xf32>
    %30 = vector.multi_reduction <add>, %25, %cst_15 [2] : vector<4x2x128xf32> to vector<4x2xf32>
    %cst_16 = arith.constant dense<0.000000e+00> : vector<4xf32>
    %31 = vector.multi_reduction <add>, %30, %cst_16 [1] : vector<4x2xf32> to vector<4xf32>
    %32 = arith.addf %29, %31 : vector<4xf32>
    %c0_17 = arith.constant 0 : index
    %c0_18 = arith.constant 0 : index
    %c0_19 = arith.constant 0 : index
    %33 = vector.load %arg4[%c0_17, %c0_18, %c0_19] : memref<1x1x4xf32, #tpu.memory_space<vmem>>, vector<1x1x4xf32>
    %34 = vector.shape_cast %33 : vector<1x1x4xf32> to vector<1x4xf32>
    %35 = vector.shape_cast %27 : vector<4xf32> to vector<1x4xf32>
    %36 = arith.addf %34, %35 : vector<1x4xf32>
    %c0_20 = arith.constant 0 : index
    %c0_21 = arith.constant 0 : index
    %c0_22 = arith.constant 0 : index
    %37 = vector.load %arg4[%c0_20, %c0_21, %c0_22] : memref<1x1x4xf32, #tpu.memory_space<vmem>>, vector<1x1x4xf32>
    %38 = vector.shape_cast %37 : vector<1x1x4xf32> to vector<1x4xf32>
    %39 = vector.shape_cast %36 : vector<1x4xf32> to vector<1x1x4xf32>
    tpu.vector_store %arg4[%c0_20, %c0_21, %c0_22], %39 {strides = array<i32>} : memref<1x1x4xf32, #tpu.memory_space<vmem>>, vector<1x1x4xf32>,
    %c0_23 = arith.constant 0 : index
    %c0_24 = arith.constant 0 : index
    %c0_25 = arith.constant 0 : index
    %40 = vector.load %arg5[%c0_23, %c0_24, %c0_25] : memref<1x1x4xf32, #tpu.memory_space<vmem>>, vector<1x1x4xf32>
    %41 = vector.shape_cast %40 : vector<1x1x4xf32> to vector<1x4xf32>
    %42 = vector.shape_cast %32 : vector<4xf32> to vector<1x4xf32>
    %43 = arith.addf %41, %42 : vector<1x4xf32>
    %c0_26 = arith.constant 0 : index
    %c0_27 = arith.constant 0 : index
    %c0_28 = arith.constant 0 : index
    %44 = vector.load %arg5[%c0_26, %c0_27, %c0_28] : memref<1x1x4xf32, #tpu.memory_space<vmem>>, vector<1x1x4xf32>
    %45 = vector.shape_cast %44 : vector<1x1x4xf32> to vector<1x4xf32>
    %46 = vector.shape_cast %43 : vector<1x4xf32> to vector<1x1x4xf32>
    tpu.vector_store %arg5[%c0_26, %c0_27, %c0_28], %46 {strides = array<i32>} : memref<1x1x4xf32, #tpu.memory_space<vmem>>, vector<1x1x4xf32>,
    return
  }
  func.func @transform_0(%arg0: i32, %arg1: i32) -> (i32, i32, i32, i32) {
    %c0_i32 = arith.constant 0 : i32
    %c0_i32_0 = arith.constant 0 : i32
    %c0_i32_1 = arith.constant 0 : i32
    return %arg0, %c0_i32, %arg1, %c0_i32_0 : i32, i32, i32, i32
  }
  func.func @transform_1(%arg0: i32, %arg1: i32) -> (i32, i32, i32, i32) {
    %c0_i32 = arith.constant 0 : i32
    %c0_i32_0 = arith.constant 0 : i32
    %c0_i32_1 = arith.constant 0 : i32
    return %arg0, %c0_i32, %arg1, %c0_i32_0 : i32, i32, i32, i32
  }
  func.func @transform_2(%arg0: i32, %arg1: i32) -> (i32, i32, i32) {
    %c0_i32 = arith.constant 0 : i32
    %c0_i32_0 = arith.constant 0 : i32
    %c0_i32_1 = arith.constant 0 : i32
    return %arg0, %c0_i32, %c0_i32_0 : i32, i32, i32
  }
  func.func @transform_3(%arg0: i32, %arg1: i32) -> (i32, i32, i32) {
    %c0_i32 = arith.constant 0 : i32
    %c0_i32_0 = arith.constant 0 : i32
    %c0_i32_1 = arith.constant 0 : i32
    return %arg0, %c0_i32, %c0_i32_0 : i32, i32, i32
  }
}

</mosaic_0001>

<bundles_post_ra>
// kernel: tpu_custom_call.1
= control target key start
LH: loop header
LB: loop body
LE: loop exit
PB: predicated region body
PF: predicated region fallthrough
CT: control target
= control target key end

     0   :  { %9 = vsyncpa [#allocation3], 0  ;;  %s1304_s0 = inlined_call_operand.hbm [shape: f32[2,4,2,128], index: 0, kind: input, shape index: {}]   ;;  %s1305_s1 = inlined_call_operand.vmem [shape: s8[2,1,2,128], index: 1, kind: input, shape index: {}]   ;;  %s1306_s2 = inlined_call_operand.hbm [shape: f32[2,1,4], index: 2, kind: output, shape index: {0}]   ;;  %s1307_s3 = inlined_call_operand.hbm [shape: f32[2,1,4], index: 3, kind: output, shape index: {1}]  }
   0x1   :  { %11 = vsyncpa [#allocation3 + $0x1], 0 }
   0x2   :  { %12 = vsyncpa [#allocation4], 0 }
   0x3   :  { %14 = vsyncpa [#allocation4 + $0x1], 0 }
   0x4   :  { %15 = vsyncpa [#allocation7], 0 }
   0x5   :  { %17 = vsyncpa [#allocation7 + $0x1], 0  ;;  %s979_s12 = smov 0   ;;  %s981_s13 = smov 0  }
   0x6   :  { %s983_s14 = smov 0   ;;  %s985_s15 = smov 0  }
   0x7   :  { %s987_s16 = smov 0   ;;  %s989_s17 = smov 0  }
   0x8 LB: > { %s703_s18 = sadd.s32 4294967295, %s949_s17   ;;  %s704_s19 = sadd.s32 4294967294, %s949_s17   ;;  %s949_s17 = sphi %s989_s17, %s23_s17   ;;  %s945_s16 = sphi %s987_s16, %s1322_s16   ;;  %s941_s15 = sphi %s985_s15, %s1321_s15   ;;  %s937_s14 = sphi %s983_s14, %s1320_s14   ;;  %s933_s13 = sphi %s981_s13, %s1319_s13   ;;  %s929_s12 = sphi %s979_s12, %s1318_s12  }
   0x9   : > { %s35_s20 = sadd.s32 1, %s945_s16  ;;  %s44_s21 = sadd.s32 1, %s937_s14 }
   0xa   : > { %p37_p0 = scmp.ge.s32.totalorder %s35_s20, 2  ;;  %p51_p1 = scmp.ne.s32.totalorder %s937_s14, %s933_s13 }
   0xb   : > { %p52_p2 = scmp.eq.s32.totalorder %s949_s17, 0  ;;  %p57_p3 = scmp.ne.s32.totalorder %s933_s13, %s929_s12 }
   0xc   : > { %s1324_s20 = smov (%p37_p0, %s35_s20), 0  ;;  %p58_p5 = scmp.eq.s32.totalorder %s703_s18, 0 }
   0xd   : > { %p1020_p4 = por %p52_p2, %p51_p1  ;;  %s39_s23 = ssub.s32 %s945_s16, %s1324_s20 }
   0xe   : > { %p109_p6 = scmp.eq.s32.totalorder %s703_s18, 1  ;;  %p42_p7 = scmp.eq.s32.totalorder %s39_s23, 0 }
   0xf   : > { %p1026_p8 = por %p58_p5, %p57_p3  ;;  %p115_p10 = scmp.eq.s32.totalorder %s704_s19, 1 }
  0x10   : > { %p1030_p9 = por %p109_p6, %p51_p1  ;;  %p738_p13 = scmp.lt.s32.totalorder %s949_s17, 2 }
  0x11   : > { %s1035_s26 = scalar_select %p42_p7, %s937_s14, %s44_s21  }
  0x12   : > { %s1311_s25 = scalar_select %p1030_p9, 1, 0 }
  0x13   : > { %p1037_p11 = por %p115_p10, %p57_p3  ;;  %s161_s28 = sand.u32 1, %s937_s14  }
  0x14   : > { %s707_s29 = sshll.u32 %s161_s28, 3  ;;  %s720_s30 = sshll.u32 %s945_s16, 7 }
  0x15   : > { %s1312_s27 = scalar_select %p1037_p11, 1, 0 }
  0x16   : > { %s1048_s6 = scalar_lea.hbm %s1304_s0, %s720_s30  ;;  %s165_s7 = scalar_lea.vmem [#allocation2], %s707_s29 }
  0x17   : > { %s173_s8 = sshll.u32 %s165_s7, 4  ;;  %p1054_p0 = pnand %p738_p13, %p1020_p4  ;;  %s1050_s8 = int_to_ptr.vmem [resolvable:$true] %s173_s8 }
  0x18   : > { %s1059_s10 = scalar_lea.sflag [#allocation3], %s161_s28  ;;  %s805_s11 = scalar_lea.hbm %s1048_s6, 128 }
  0x19   : > { %p806_p2 = scmp.ne.s32.totalorder %s1048_s6, %s805_s11  ;;  %p807_p3 = pneg %p1054_p0 }
  0x1a   : > { %s810_s21 = scalar_lea.hbm %s1304_s0, 256  ;;  %p811_p4 = scmp.lt.u32.totalorder %s1048_s6, %s1304_s0 }
  0x1b   : > { %p808_p5 = pnand %p807_p3, %p806_p2  ;;  %p812_p7 = scmp.lt.u32.totalorder %s810_s21, %s805_s11 }
  0x1c   : > { %p814_p13 = scmp.lt.u32.totalorder %s805_s11, %s1048_s6 }
  0x1d   : > { %p809_p6 = pneg %p808_p5  ;;  %p813_p10 = por %p812_p7, %p811_p4 }
  0x1f   : > { %p815_p12 = por %p814_p13, %p813_p10 }
  0x21   : > { %p816_p1 = pnand %p815_p12, %p809_p6 }
  0x23   : > { %819 = shalt.err (!%p816_p1)
}
  0x24   : > { %s820_s28 = scalar_lea.vmem %s1050_s8, 128  ;;  %s951_s29 = smov [#allocation2]  }
  0x25   : > { %p821_p2 = scmp.ne.s32.totalorder %s1050_s8, %s820_s28  ;;  %s825_s30 = sshll.u32 %s951_s29, 4  ;;  %s826_s30 = int_to_ptr.vmem [resolvable:$false] %s825_s30 }
  0x26   : > { %s827_s4 = scalar_lea.vmem %s826_s30, 256  ;;  %p828_p9 = scmp.lt.s32.totalorder %s1050_s8, %s826_s30 }
  0x27   : > { %p823_p5 = pnand %p821_p2, %p807_p3  ;;  %p829_p4 = scmp.lt.s32.totalorder %s827_s4, %s820_s28 }
  0x29   : > { %p824_p11 = pneg %p823_p5  ;;  %p830_p7 = por %p829_p4, %p828_p9 }
  0x2b   : > { %p831_p10 = pnand %p830_p7, %p824_p11 }
  0x2d   : > { %834 = shalt.err (!%p831_p10)
}
  0x2e   : > { %s952_s5 = smov 32   ;;  %s953_s7 = smov 2  }
  0x2f   : > { %730 = dma.hbm_to_vmem [thread:$0]  (!%p1054_p0), %s1048_s6, 128, %s1050_s8, %s1059_s10, %s952_s5, %s952_s5, %s953_s7  }
  0x30   : > { %p190_p12 = scmp.lt.s32.totalorder %s949_s17, 3  ;;  %p1314_p1 = scmp.ge.s32.totalorder %s949_s17, 1 }
  0x32   : > { %p191_p3 = pnand %p1314_p1, %p190_p12 }
  0x33   : > { %s1091_s11 = sand.u32 (!%p191_p3), 1, %s933_s13  }
  0x34   : > { %194 = sbr.rel (%p191_p3) target bundleno = 591 (0x24f), region = 28  ;;  %s711_s18 = sshll.u32 (!%p191_p3), %s1091_s11, 3 }
  0x35   : > { %s197_s19 = scalar_lea.sflag (!%p191_p3), [#allocation3], %s1091_s11  ;;  %s200_s21 = scalar_lea.vmem (!%p191_p3), [#allocation2], %s711_s18 }
  0x3b   : > { %916 = dma.done.wait (%p1026_p8), %s197_s19, 128  }
  0x3c   : > { %918 = vsyncadd (%p1026_p8), %s197_s19, 4294967168  ;;  %p232_p9 = scmp.lt.s32.totalorder %s941_s15, 1  ;;  %vm250_vm0 = vcmask 1041408   ;;  %v245_v1 = vld [vmem:[%s200_s21] sm:$0x3]  ;;  %v954_v12 = vmov 0.0   ;;  %v316_v58 = vlaneseq }
  0x3d   : > { %v246_v2 = vld [vmem:[%s200_s21 + $0x2] sm:$0x3]  ;;  %v247_v4 = vld [vmem:[%s200_s21 + $0x4] sm:$0x3]  ;;  %v248_v5 = vld [vmem:[%s200_s21 + $0x6] sm:$0x3] }
  0x3e   : > { %s233_s6 = scalar_select %p232_p9, %s941_s15, 1  ;;  %v251_v6 = vsel %vm250_vm0, %v245_v1, -inf  ;;  %v252_v7 = vsel %vm250_vm0, %v246_v2, -inf  ;;  %v253_v8 = vsel %vm250_vm0, %v247_v4, -inf  ;;  %v254_v9 = vsel %vm250_vm0, %v248_v5, -inf }
  0x3f   : > { %v255_v10 = vmax.f32 %v251_v6, %v252_v7  ;;  %v256_v11 = vmax.f32 %v253_v8, %v254_v9  ;;  %v317_v59 = vand.u32 127, %v316_v58  ;;  %v1150_v60 = vshrl.u32 %v316_v58, 7  ;;  %s1180_s24 = scalar_lea.vmem [#allocation6], %s1091_s11  ;;  %s1199_s22 = scalar_lea.vmem [#allocation5], %s1091_s11 }
  0x40   : > { %s237_s10 = scalar_lea.vmem %s1305_s1, %s233_s6  ;;  %vm334_vm5 = vcmask 1041409   ;;  %vm336_vm6 = vcmask 1042434   ;;  %vm338_vm7 = vcmask 1043459   ;;  %vm341_vm8 = vcmask 11264   ;;  %s716_s23 = sshll.u32 %s941_s15, 4 }
  0x41   : > { %v249_v0 = vld [vmem:[%s237_s10] sm:$0x1]  ;;  %v257_v16 = vmax.f32 %v255_v10, %v256_v11  ;;  %v1153_v62 = vsub.s32 %v317_v59, %v1150_v60  ;;  %vm242_vm9 = vcmask 24576   ;;  %s587_s28 = sshll.u32 %s1180_s24, 4  ;;  %s1215_s4 = scalar_lea.hbm %s1307_s3, %s716_s23  ;;  %s1217_s28 = int_to_ptr.vmem [resolvable:$true] %s587_s28 }
  0x42   : > { %v1104_v3 = vunpack.c.0.s8 %v249_v0  ;;  %244 = vst.msk [vmem:[%s1180_s24] sm:$0x1] %vm242_vm9, %v954_v12  ;;  %243 = vst.msk [vmem:[%s1199_s22] sm:$0x1] %vm242_vm9, %v954_v12  ;;  %s562_s5 = scalar_lea.sflag [#allocation7], %s1091_s11  ;;  %s835_s7 = scalar_lea.vmem %s1217_s28, 16 }
  0x43   : > { %v258_v18 = vsub.f32 %v245_v1, %v257_v16  ;;  %v259_v19 = vsub.f32 %v246_v2, %v257_v16  ;;  %v260_v20 = vsub.f32 %v247_v4, %v257_v16  ;;  %v261_v21 = vsub.f32 %v248_v5, %v257_v16  ;;  %p836_p8 = scmp.ne.s32.totalorder %s1217_s28, %s835_s7  ;;  %p1315_p11 = scmp.ne.s32.totalorder %s1311_s25, 0 }
  0x44   : > { %vm284_vm1 = vcmp.eq.s32.totalorder %v1104_v3, 0  ;;  %vm285_vm2 = vcmp.eq.s32.totalorder %v1104_v3, 1  ;;  %vm286_vm3 = vcmp.eq.s32.totalorder %v1104_v3, 2  ;;  %vm287_vm4 = vcmp.eq.s32.totalorder %v1104_v3, 3  ;;  %s957_s18 = smov [#allocation6]  }
  0x45   : > { %v712_v13 = vsel %vm284_vm1, 1.0, %v954_v12  ;;  %v713_v14 = vsel %vm285_vm2, 1.0, %v954_v12  ;;  %v714_v22 = vsel %vm286_vm3, 1.0, %v954_v12  ;;  %v262_v23 = vmul.f32 1.442695, %v258_v18  ;;  %p837_p0 = pnand %p836_p8, %p1315_p11  ;;  %s839_s19 = sshll.u32 %s957_s18, 4  ;;  %s840_s19 = int_to_ptr.vmem [resolvable:$false] %s839_s19 }
  0x46   : > { %v384_v15 = vsel %vm250_vm0, %v712_v13, 0.0  ;;  %v387_v17 = vsel %vm250_vm0, %v713_v14, 0.0  ;;  %v264_v24 = vmul.f32 1.442695, %v259_v19  ;;  %v266_v25 = vmul.f32 1.442695, %v260_v20  ;;  %p842_p13 = scmp.lt.s32.totalorder %s1217_s28, %s840_s19 }
  0x47   : > { %385 = vadd.xlane.f32.xlu1 %v384_v15  ;;  %v268_v26 = vmul.f32 1.442695, %v261_v21  ;;  %v390_v27 = vsel %vm250_vm0, %v714_v22, 0.0  ;;  %795 = vpow2.f32 %v262_v23  ;;  %v715_v28 = vsel %vm287_vm4, 1.0, %v954_v12  ;;  %p838_p6 = pneg %p837_p0  ;;  %s841_s21 = scalar_lea.vmem %s840_s19, 32 }
  0x48   : > { %797 = vpow2.f32 %v264_v24  ;;  %v393_v29 = vsel %vm250_vm0, %v715_v28, 0.0  ;;  %p843_p2 = scmp.lt.s32.totalorder %s841_s21, %s835_s7 }
  0x49   : > { %799 = vpow2.f32 %v266_v25 }
  0x4a   : > { %801 = vpow2.f32 %v268_v26  ;;  %p844_p5 = por %p843_p2, %p842_p13 }
  0x4b   : > { %388 = vadd.xlane.f32.xlu1 %v387_v17 }
  0x4c   : > { %p845_p4 = pnand %p844_p5, %p838_p6 }
  0x4f   : > { %391 = vadd.xlane.f32.xlu1 %v390_v27 }
  0x51   : > { %v796_v30 = vpop.eup %795 }
  0x52   : > { %v798_v31 = vpop.eup %797  ;;  %v270_v32 = vsel %vm250_vm0, %v796_v30, 0.0 }
  0x53   : > { %394 = vadd.xlane.f32.xlu1 %v393_v29  ;;  %v800_v33 = vpop.eup %799  ;;  %v271_v34 = vsel %vm250_vm0, %v798_v31, 0.0 }
  0x54   : > { %v802_v35 = vpop.eup %801  ;;  %v272_v36 = vadd.f32 %v271_v34, %v270_v32  ;;  %v273_v37 = vsel %vm250_vm0, %v800_v33, 0.0 }
  0x55   : > { %v275_v38 = vsel %vm250_vm0, %v802_v35, 0.0 }
  0x56   : > { %v274_v39 = vadd.f32 %v273_v37, %v272_v36  ;;  %v956_v36 = vmov 1966171168  }
  0x57   : > { %v445_v37 = vunpack.c.l.s4 %v956_v36 }
  0x58   : > { %v276_v40 = vadd.f32 %v275_v38, %v274_v39  ;;  %v428_v39 = vsub.s32 0, %v1150_v60 }
  0x59   : > { %v446_v38 = vunpack.c.0.s8 %v445_v37 }
  0x5a   : > { %803 = vrcp.f32 %v276_v40  ;;  %v432_v40 = vsub.s32 1, %v1150_v60 }
  0x64   : > { %v804_v41 = vpop.eup %803 }
  0x65   : > { %v279_v42 = vmul.f32 %v804_v41, %v796_v30  ;;  %v280_v43 = vmul.f32 %v804_v41, %v798_v31  ;;  %v282_v44 = vmul.f32 %v804_v41, %v802_v35  ;;  %v281_v49 = vmul.f32 %v804_v41, %v800_v33 }
  0x66   : > { %v955_v35 = vmov 0   ;;  %v436_v41 = vsub.s32 2, %v1150_v60 }
  0x67   : > { %v345_v45 = vsel %vm250_vm0, %v279_v42, 0.0  ;;  %v289_v46 = vsel %vm285_vm2, %v280_v43, 0.0  ;;  %v291_v47 = vsel %vm287_vm4, %v282_v44, 0.0  ;;  %v348_v48 = vsel %vm250_vm0, %v280_v43, 0.0  ;;  %794 = vset.pattern.permute.xlu0 %v955_v35  ;;  %793 = vset.pattern.permute.xlu1 %v955_v35 }
  0x68   : > { %346 = vadd.xlane.f32.xlu0 %v345_v45  ;;  %v303_v50 = vsel %vm250_vm0, %v289_v46, 0.0  ;;  %v309_v51 = vsel %vm250_vm0, %v291_v47, 0.0  ;;  %v351_v52 = vsel %vm250_vm0, %v281_v49, 0.0  ;;  %v354_v53 = vsel %vm250_vm0, %v282_v44, 0.0 }
  0x69   : > { %304 = vadd.xlane.f32.xlu1 %v303_v50  ;;  %v288_v54 = vsel %vm284_vm1, %v279_v42, 0.0  ;;  %v290_v56 = vsel %vm286_vm3, %v281_v49, 0.0  ;;  %v440_v42 = vsub.s32 3, %v1150_v60  ;;  %v1190_v46 = vsub.s32 %v446_v38, %v1150_v60 }
  0x6a   : > { %v300_v55 = vsel %vm250_vm0, %v288_v54, 0.0  ;;  %v306_v57 = vsel %vm250_vm0, %v290_v56, 0.0 }
  0x6c   : > { %349 = vadd.xlane.f32.xlu0 %v348_v48 }
  0x6d   : > { %310 = vadd.xlane.f32.xlu1 %v309_v51 }
  0x70   : > { %352 = vadd.xlane.f32.xlu0 %v351_v52 }
  0x74   : > { %355 = vadd.xlane.f32.xlu0 %v354_v53 }
  0x78   : > { %301 = vadd.xlane.f32.xlu0 %v300_v55 }
  0x7c   : > { %307 = vadd.xlane.f32.xlu0 %v306_v57 }
  0xd4   : > { %v386_v61 = vpop.xlane.xlu1 %385 }
  0xd5   : > { %v403_v0 = vrot.slane %v386_v61, %v1153_v62 }
  0xd8   : > { %v389_v63 = vpop.xlane.xlu1 %388 }
  0xd9   : > { %v407_v1 = vrot.slane %v389_v63, %v1153_v62 }
  0xdb   : > { %v416_v3 = vsel %vm334_vm5, %v407_v1, %v403_v0 }
  0xdc   : > { %v392_v2 = vpop.xlane.xlu1 %391 }
  0xdd   : > { %v411_v4 = vrot.slane %v392_v2, %v1153_v62 }
  0xdf   : > { %v417_v6 = vsel %vm336_vm6, %v411_v4, %v416_v3 }
  0xe0   : > { %v395_v5 = vpop.xlane.xlu1 %394 }
  0xe1   : > { %v415_v7 = vrot.slane %v395_v5, %v1153_v62 }
  0xe3   : > { %v418_v8 = vsel %vm338_vm7, %v415_v7, %v417_v6 }
  0xe4   : > { %v420_v9 = vsel %vm341_vm8, %v418_v8, 0.0  ;;  %v491_v8 = vld [vmem:[%s1180_s24] sm:$0x1] }
  0xe5   : > { %421 = vadd.xlane.f32.xlu1 %v420_v9 }
  0xf5   : > { %v347_v10 = vpop.xlane.xlu0 %346 }
  0xf6   : > { %v364_v16 = vrot.slane %v347_v10, %v1153_v62  ;;  %v305_v17 = vpop.xlane.xlu1 %304 }
  0xf7   : > { %v325_v26 = vrot.slane %v305_v17, %v1153_v62 }
  0xf9   : > { %v350_v11 = vpop.xlane.xlu0 %349 }
  0xfa   : > { %v368_v14 = vrot.slane %v350_v11, %v1153_v62  ;;  %v311_v25 = vpop.xlane.xlu1 %310 }
  0xfb   : > { %v333_v29 = vrot.slane %v311_v25, %v1153_v62 }
  0xfc   : > { %v377_v19 = vsel %vm334_vm5, %v368_v14, %v364_v16 }
  0xfd   : > { %v353_v13 = vpop.xlane.xlu0 %352 }
  0xfe   : > { %v372_v15 = vrot.slane %v353_v13, %v1153_v62 }
 0x100   : > { %v378_v21 = vsel %vm336_vm6, %v372_v15, %v377_v19 }
 0x101   : > { %v356_v18 = vpop.xlane.xlu0 %355 }
 0x102   : > { %v376_v20 = vrot.slane %v356_v18, %v1153_v62 }
 0x104   : > { %v379_v22 = vsel %vm338_vm7, %v376_v20, %v378_v21 }
 0x105   : > { %v302_v23 = vpop.xlane.xlu0 %301  ;;  %v381_v24 = vsel %vm341_vm8, %v379_v22, 0.0 }
 0x106   : > { %382 = vadd.xlane.f32.xlu0 %v381_v24  ;;  %v321_v27 = vrot.slane %v302_v23, %v1153_v62 }
 0x108   : > { %v335_v31 = vsel %vm334_vm5, %v325_v26, %v321_v27 }
 0x109   : > { %v308_v28 = vpop.xlane.xlu0 %307 }
 0x10a   : > { %v329_v30 = vrot.slane %v308_v28, %v1153_v62 }
 0x10c   : > { %v337_v32 = vsel %vm336_vm6, %v329_v30, %v335_v31 }
 0x10d   : > { %v339_v33 = vsel %vm338_vm7, %v333_v29, %v337_v32 }
 0x10e   : > { %v342_v34 = vsel %vm341_vm8, %v339_v33, 0.0 }
 0x10f   : > { %343 = vadd.xlane.f32.xlu0 %v342_v34 }
 0x172   : > { %v422_v43 = vpop.xlane.xlu1 %421 }
 0x193   : > { %v383_v44 = vpop.xlane.xlu0 %382 }
 0x194   : > { %v423_v45 = vadd.f32 %v422_v43, %v383_v44 }
 0x196   : > { %v496_v47 = vrot.slane %v423_v45, %v428_v39  ;;  %v500_v48 = vrot.slane %v423_v45, %v432_v40  ;;  %v504_v49 = vrot.slane %v423_v45, %v436_v41  ;;  %v508_v50 = vrot.slane %v423_v45, %v440_v42 }
 0x198   : > { %v509_v51 = vcombine.low %v496_v47, %v500_v48  ;;  %v510_v52 = vcombine.low %v504_v49, %v508_v50 }
 0x19a   : > { %v517_v53 = vrot.slane %v509_v51, %v1190_v46  ;;  %v524_v54 = vrot.slane %v510_v52, %v1190_v46 }
 0x19c   : > { %v344_v55 = vpop.xlane.xlu0 %343  ;;  %v525_v56 = vcombine.low %v517_v53, %v524_v54 }
 0x19d   : > { %v429_v57 = vrot.slane %v344_v55, %v428_v39  ;;  %v433_v58 = vrot.slane %v344_v55, %v432_v40  ;;  %v437_v59 = vrot.slane %v344_v55, %v436_v41  ;;  %v441_v61 = vrot.slane %v344_v55, %v440_v42 }
 0x19e   : > { %v532_v60 = vrot.slane %v525_v56, %v1190_v46 }
 0x19f   : > { %v442_v63 = vcombine.low %v429_v57, %v433_v58  ;;  %v443_v0 = vcombine.low %v437_v59, %v441_v61 }
 0x1a0   : > { %534 = vperm.xlu0 %794, %v532_v60  }
 0x1a1   : > { %v450_v1 = vrot.slane %v442_v63, %v1190_v46  ;;  %v457_v2 = vrot.slane %v443_v0, %v1190_v46 }
 0x1a3   : > { %v458_v3 = vcombine.low %v450_v1, %v457_v2 }
 0x1a5   : > { %v465_v4 = vrot.slane %v458_v3, %v1190_v46 }
 0x1a7   : > { %467 = vperm.xlu1 %793, %v465_v4  }
 0x21f   : > { %v535_v5 = vpop.permute.xlu0 %534 }
 0x220   : > { %v539_v6 = vrot.slane %v535_v5, %v1153_v62 }
 0x222   : > { %v546_v7 = vrot.slane %v539_v6, %v1190_v46 }
 0x224   : > { %v553_v9 = vrot.slane %v546_v7, %v1190_v46 }
 0x226   : > { %v555_v10 = vadd.f32 %v553_v9, %v491_v8  ;;  %v468_v11 = vpop.permute.xlu1 %467 }
 0x227   : > { %v472_v12 = vrot.slane %v468_v11, %v1153_v62 }
 0x228   : > { %556 = vst.msk [vmem:[%s1180_s24] sm:$0x1] %vm242_vm9, %v555_v10 }
 0x229   : > { %v479_v13 = vrot.slane %v472_v12, %v1190_v46 }
 0x22a   : > { %848 = shalt.err (!%p845_p4)
}
 0x22b   : > { %s849_s6 = scalar_lea.hbm %s1215_s4, 16  ;;  %s853_s10 = scalar_lea.hbm %s1307_s3, 32 }
 0x22c   : > { %p850_p7 = scmp.ne.s32.totalorder %s1215_s4, %s849_s6  ;;  %p854_p1 = scmp.lt.u32.totalorder %s1215_s4, %s1307_s3 }
 0x22d   : > { %p855_p3 = scmp.lt.u32.totalorder %s853_s10, %s849_s6  ;;  %p857_p8 = scmp.lt.u32.totalorder %s849_s6, %s1215_s4 }
 0x22e   : > { %p851_p10 = pnand %p850_p7, %p1315_p11 }
 0x22f   : > { %p856_p9 = por %p855_p3, %p854_p1 }
 0x230   : > { %p852_p12 = pneg %p851_p10 }
 0x231   : > { %p858_p0 = por %p857_p8, %p856_p9 }
 0x233   : > { %p859_p6 = pnand %p858_p0, %p852_p12 }
 0x235   : > { %862 = shalt.err (!%p859_p6)
}
 0x236   : > { %724 = dma.vmem_to_hbm [thread:$0]  (%p1315_p11), %s1217_s28, 16, %s1215_s4, %s562_s5   ;;  %v424_v62 = vld [vmem:[%s1199_s22] sm:$0x1]  ;;  %v486_v14 = vrot.slane %v479_v13, %v1190_v46 }
 0x237   : > { %s574_s30 = sshll.u32 %s1199_s22, 4  ;;  %s1253_s19 = scalar_lea.hbm %s1306_s2, %s716_s23  ;;  %s1255_s30 = int_to_ptr.vmem [resolvable:$true] %s574_s30 }
 0x238   : > { %v488_v15 = vadd.f32 %v486_v14, %v424_v62  ;;  %s558_s21 = scalar_lea.sflag [#allocation4], %s1091_s11  ;;  %s863_s28 = scalar_lea.vmem %s1255_s30, 16 }
 0x239   : > { %p864_p13 = scmp.ne.s32.totalorder %s1255_s30, %s863_s28  ;;  %s958_s4 = smov [#allocation5]  }
 0x23a   : > { %490 = vst.msk [vmem:[%s1199_s22] sm:$0x1] %vm242_vm9, %v488_v15  ;;  %s867_s15 = sshll.u32 %s958_s4, 4  ;;  %s868_s15 = int_to_ptr.vmem [resolvable:$false] %s867_s15 }
 0x23b   : > { %p865_p2 = pnand %p864_p13, %p1315_p11  ;;  %s869_s5 = scalar_lea.vmem %s868_s15, 32 }
 0x23c   : > { %p870_p4 = scmp.lt.s32.totalorder %s1255_s30, %s868_s15  ;;  %p871_p7 = scmp.lt.s32.totalorder %s869_s5, %s863_s28 }
 0x23d   : > { %p866_p5 = pneg %p865_p2 }
 0x23e   : > { %p872_p10 = por %p871_p7, %p870_p4 }
 0x240   : > { %p873_p12 = pnand %p872_p10, %p866_p5 }
 0x242   : > { %876 = shalt.err (!%p873_p12)
}
 0x243   : > { %s877_s11 = scalar_lea.hbm %s1253_s19, 16  ;;  %s881_s6 = scalar_lea.hbm %s1306_s2, 32 }
 0x244   : > { %p878_p1 = scmp.ne.s32.totalorder %s1253_s19, %s877_s11  ;;  %p882_p8 = scmp.lt.u32.totalorder %s1253_s19, %s1306_s2 }
 0x245   : > { %p883_p0 = scmp.lt.u32.totalorder %s881_s6, %s877_s11  ;;  %p885_p13 = scmp.lt.u32.totalorder %s877_s11, %s1253_s19 }
 0x246   : > { %p879_p3 = pnand %p878_p1, %p1315_p11 }
 0x247   : > { %p884_p6 = por %p883_p0, %p882_p8 }
 0x248   : > { %p880_p9 = pneg %p879_p3 }
 0x249   : > { %p886_p2 = por %p885_p13, %p884_p6 }
 0x24b   : > { %p887_p5 = pnand %p886_p2, %p880_p9 }
 0x24d   : > { %890 = shalt.err (!%p887_p5)
}
 0x24e   : > { %723 = dma.vmem_to_hbm [thread:$0]  (%p1315_p11), %s1255_s30, 16, %s1253_s19, %s558_s21  }
 0x24f PF: > { %s599_s10 = sand.u32 1, %s929_s12   ;;  %p1316_p4 = scmp.ne.s32.totalorder %s1312_s27, 0 }
 0x250   : > { %p1317_p7 = scmp.ge.s32.totalorder %s949_s17, 2  ;;  %s600_s24 = scalar_lea.sflag [#allocation4], %s599_s10 }
 0x252   : > { %p732_p10 = pnand %p1317_p7, %p1316_p4 }
 0x254   : > { %920 = dma.done.wait (!%p732_p10), %s600_s24, 16  }
 0x255   : > { %922 = vsyncadd (!%p732_p10), %s600_s24, 4294967280  ;;  %s608_s29 = scalar_lea.sflag [#allocation7], %s599_s10 }
 0x256   : > { %924 = dma.done.wait (!%p732_p10), %s608_s29, 16  }
 0x257   : > { %926 = vsyncadd (!%p732_p10), %s608_s29, 4294967280  ;;  %s23_s17 = sadd.s32 1, %s949_s17   ;;  %s1318_s12 = smov %s933_s13 }
 0x258   : > { %p20_p12 = scmp.ge.s32.totalorder %s23_s17, 4   ;;  %s1319_s13 = smov %s937_s14 }
 0x259   : > { %s1320_s14 = smov %s1035_s26  ;;  %s1321_s15 = smov %s945_s16 }
 0x25a   : > { %s1322_s16 = smov %s1324_s20  ;;  %22 = sbr.rel (!%p20_p12) target bundleno = 8 (0x8), region = 97 }
 0x261   :  { %612 = vsyncpa [#allocation3], 1 }
 0x262   :  { %614 = vsyncpa [#allocation3 + $0x1], 1 }
 0x263   :  { %615 = vsyncpa [#allocation4], 1 }
 0x264   :  { %617 = vsyncpa [#allocation4 + $0x1], 1 }
 0x265   :  { %618 = vsyncpa [#allocation7], 1 }
 0x266   :  { %620 = vsyncpa [#allocation7 + $0x1], 1 }

</bundles_post_ra>
